<compile_context>
chip_gen: v6e
topology: v6e:2x2x1
jax: 0.10.0
libtpu: 0.0.40
codegen_flags: <defaults>
</compile_context>

<pallas_src>
import functools

import jax
import jax.numpy as jnp
from jax.experimental import pallas as pl
from jax.experimental.pallas import tpu as pltpu


def _round_up(v, m):
    return (v + m - 1) // m * m


def _cdiv(a, b):
    return (a + b - 1) // b


# ----------------------------- Pallas kernel -------------------------------
def _linear_relu_kernel(x_ref, w_ref, b_ref, o_ref):
    # x_ref: (TILE_B, Hin_p) bf16, w_ref: (Hin_p, Hout_p) resident bf16,
    # b_ref: (1, Hout_p) f32, o_ref: (TILE_B, Hout_p) lane-dense 2-D store.
    y = jnp.dot(x_ref[...], w_ref[...], preferred_element_type=jnp.float32)
    y = y + b_ref[...]                       # f32 VPU epilogue (bias broadcast)
    o_ref[...] = jnp.maximum(y, 0.0).astype(o_ref.dtype)


@functools.partial(
    jax.jit, static_argnames=("n_devices", "use_bf16", "single_buffer_resident")
)
def _forward_impl(x, w, b, n_devices, use_bf16, single_buffer_resident):
    B, H_in = x.shape
    H_out = w.shape[1]
    assert B % n_devices == 0, (
        f"batch ({B}) must split evenly across device_ids ({n_devices})"
    )
    rows = B // n_devices

    # Feature padding to full lanes (weights padded once, output sliced back).
    # TODO(synk): pad to 256 on v6e/v7x for narrow layers (2x256x256 MXU);
    # 128 is the native width on v5e and always correct.
    LANE = 128
    hi_p = _round_up(H_in, LANE)
    ho_p = _round_up(H_out, LANE)

    # Per-device batch tiling: near-equal 8-aligned tiles, <= 512 rows each,
    # and guarantee the total grid has >= 2 steps (v7x has 2 TensorCores).
    n_row_tiles = max(1, _cdiv(rows, 512))
    if n_devices * n_row_tiles < 2 and rows >= 16:
        n_row_tiles = 2
    tile_b = _round_up(_cdiv(rows, n_row_tiles), 8)
    rows_p = n_row_tiles * tile_b

    # Shard-shaped layout (n_dev, rows_p, feature); pad only when needed
    # (padding/unpadding is a full extra HBM pass of the activation).
    x3 = x.reshape(n_devices, rows, H_in)
    if rows_p != rows or hi_p != H_in:
        x3 = jnp.pad(x3, ((0, 0), (0, rows_p - rows), (0, hi_p - H_in)))
    w_p = w if (hi_p == H_in and ho_p == H_out) else jnp.pad(
        w, ((0, hi_p - H_in), (0, ho_p - H_out)))
    bias_p = b if ho_p == H_out else jnp.pad(b, (0, ho_p - H_out))
    bias_p = bias_p.astype(jnp.float32).reshape(1, ho_p)

    if use_bf16:
        # bf16 operands -> native MXU rate, half the HBM/VMEM traffic.
        # f32 accumulate + f32 epilogue keep the error bounded.
        x3 = x3.astype(jnp.bfloat16)
        w_p = w_p.astype(jnp.bfloat16)
    # TODO(synk): on v7x, fp8 weights (bf16+fp8 MXU) halve weight VMEM again.

    # Resident operands (constant index_map): single-buffer to free VMEM.
    resident_kw = (
        dict(pipeline_mode=pl.Buffered(1)) if single_buffer_resident else {}
    )

    # TODO(synk): for real layer sizes (large H_in/H_out) add K/N grid axes
    # with an f32 accumulator scratch + pl.when init/finalize and set
    # vmem_limit_bytes explicitly (v7x has only 64 MiB VMEM).
    grid = (n_devices, n_row_tiles)
    grid_spec = pltpu.PrefetchScalarGridSpec(
        num_scalar_prefetch=0,
        grid=grid,
        in_specs=[
            # per-shard batch tile (device dim squeezed out of the kernel view)
            pl.BlockSpec((None, tile_b, hi_p), lambda d, i: (d, i, 0)),
            # resident replicated weight / bias (shared across all "devices")
            pl.BlockSpec((hi_p, ho_p), lambda d, i: (0, 0), **resident_kw),
            pl.BlockSpec((1, ho_p), lambda d, i: (0, 0), **resident_kw),
        ],
        out_specs=pl.BlockSpec((None, tile_b, ho_p), lambda d, i: (d, i, 0)),
    )

    out_itemsize = jnp.dtype(x.dtype).itemsize
    flops = 2 * n_devices * rows_p * hi_p * ho_p
    bytes_accessed = (
        x3.size * x3.dtype.itemsize
        + w_p.size * w_p.dtype.itemsize
        + bias_p.size * 4
        + n_devices * rows_p * ho_p * out_itemsize
    )

    out_p = pl.pallas_call(
        _linear_relu_kernel,
        out_shape=jax.ShapeDtypeStruct((n_devices, rows_p, ho_p), x.dtype),
        grid_spec=grid_spec,
        compiler_params=pltpu.CompilerParams(
            # (device, row-tile) axes both independent -> shardable across TCs
            dimension_semantics=("parallel", "parallel"),
        ),
        cost_estimate=pl.CostEstimate(
            flops=flops, transcendentals=0, bytes_accessed=bytes_accessed
        ),
    )(x3, w_p, bias_p)

    # "Scatter" = per-device shards written directly by the kernel; only strip
    # padding if any was added.
    if rows_p == rows and ho_p == H_out:
        shards = tuple(out_p[i] for i in range(n_devices))
    else:
        shards = tuple(out_p[i, :rows, :H_out] for i in range(n_devices))
    return shards


def data_parallel_forward(x, w, b, n_devices, use_bf16=True):
    """Pallas equivalent of DataParallel.forward((x,)).

    Runs the replicated net (shared w, b) over the whole batch with one
    batch-tiled matmul kernel whose output is already laid out as per-device
    shards.  Returns a list of per-device outputs, matching
    torch.nn.parallel.parallel_apply's return value.
    """
    try:
        shards = _forward_impl(x, w, b, n_devices, use_bf16, True)
    except Exception:
        # pl.Buffered(1) unsupported on this jax/libtpu build: fall back to
        # default double-buffering of the resident weight/bias.
        shards = _forward_impl(x, w, b, n_devices, use_bf16, False)
    return list(shards)


# TODO(synk): extra un-scattered args (inputs[1:]) and parallel_loss /
# parallel_backward (host-side bookkeeping + autograd) have no Pallas hot path
# and are not reproduced here.


# ------------------------------ reference ----------------------------------
def _ref_forward(x, w, b, n_devices):
    shards = jnp.split(x, n_devices, axis=0)
    return [jnp.maximum(s @ w + b, 0.0) for s in shards]


if __name__ == "__main__":
    N_DEV = 2        # simulated device_ids = [0, 1]
    B, H_IN, H_OUT = 16, 32, 32

    key = jax.random.PRNGKey(0)
    kx, kw, kb = jax.random.split(key, 3)
    x = jax.random.normal(kx, (B, H_IN), dtype=jnp.float32)
    w = jax.random.normal(kw, (H_IN, H_OUT), dtype=jnp.float32) * 0.1
    bias = jax.random.normal(kb, (H_OUT,), dtype=jnp.float32) * 0.1

    refs = _ref_forward(x, w, bias, N_DEV)

    # bf16 MXU path (default): loosened tolerance vs f32 reference.
    outs = data_parallel_forward(x, w, bias, N_DEV, use_bf16=True)
    outs = [jax.block_until_ready(o) for o in outs]
    for o, r in zip(outs, refs):
        assert o.shape == (B // N_DEV, H_OUT), o.shape
        assert jnp.allclose(o, r, rtol=2e-2, atol=2e-2), "bf16 mismatch vs ref"

    # f32 sanity path: tight tolerance.
    outs32 = data_parallel_forward(x, w, bias, N_DEV, use_bf16=False)
    outs32 = [jax.block_until_ready(o) for o in outs32]
    for o, r in zip(outs32, refs):
        assert jnp.allclose(o, r, atol=1e-5), "f32 mismatch vs reference"

    print("KERNEL_OK")
</pallas_src>

<mosaic_0001>
module attributes {stable_mosaic.version = 11 : i64} {
  func.func @_linear_relu_kernel(%arg0: i32, %arg1: i32, %arg2: memref<1x8x128xbf16, #tpu.memory_space<vmem>>, %arg3: memref<128x128xbf16, #tpu.memory_space<vmem>>, %arg4: memref<1x128xf32, #tpu.memory_space<vmem>>, %arg5: memref<1x8x128xf32, #tpu.memory_space<vmem>>) attributes {dimension_semantics = [#tpu.dimension_semantics<parallel>, #tpu.dimension_semantics<parallel>], iteration_bounds = array<i64: 2, 1>, scalar_prefetch = 0 : i64, scratch_operands = 0 : i64, tpu.core_type = #tpu.core_type<tc>, window_params = [{transform_indices = @transform_0, window_bounds = array<i64: 1, 8, 128>}, {pipeline_mode = #tpu.pipeline_mode<synchronous>, transform_indices = @transform_1, window_bounds = array<i64: 128, 128>}, {pipeline_mode = #tpu.pipeline_mode<synchronous>, transform_indices = @transform_2, window_bounds = array<i64: 1, 128>}, {transform_indices = @transform_3, window_bounds = array<i64: 1, 8, 128>}]} {
    %c0 = arith.constant 0 : index
    %c0_0 = arith.constant 0 : index
    %c0_1 = arith.constant 0 : index
    %0 = vector.load %arg2[%c0, %c0_0, %c0_1] : memref<1x8x128xbf16, #tpu.memory_space<vmem>>, vector<1x8x128xbf16>
    %1 = vector.shape_cast %0 : vector<1x8x128xbf16> to vector<8x128xbf16>
    %c0_2 = arith.constant 0 : index
    %c0_3 = arith.constant 0 : index
    %2 = vector.load %arg3[%c0_2, %c0_3] : memref<128x128xbf16, #tpu.memory_space<vmem>>, vector<128x128xbf16>
    %cst = arith.constant dense<0.000000e+00> : vector<8x128xf32>
    %3 = tpu.matmul %1, %2, %cst {dimension_numbers = #tpu.dot_dimension_numbers<[1], [0], [0], [1], [0, 0, 1, 1], [], []>} : vector<8x128xbf16>, vector<128x128xbf16>, vector<8x128xf32> -> vector<8x128xf32>
    %c0_4 = arith.constant 0 : index
    %c0_5 = arith.constant 0 : index
    %4 = vector.load %arg4[%c0_4, %c0_5] : memref<1x128xf32, #tpu.memory_space<vmem>>, vector<1x128xf32>
    %5 = vector.broadcast %4 : vector<1x128xf32> to vector<8x128xf32>
    %6 = arith.addf %3, %5 : vector<8x128xf32>
    %cst_6 = arith.constant 0.000000e+00 : f32
    %7 = vector.broadcast %cst_6 : f32 to vector<8x128xf32>
    %8 = arith.maximumf %6, %7 : vector<8x128xf32>
    %c0_7 = arith.constant 0 : index
    %c0_8 = arith.constant 0 : index
    %c0_9 = arith.constant 0 : index
    %9 = vector.load %arg5[%c0_7, %c0_8, %c0_9] : memref<1x8x128xf32, #tpu.memory_space<vmem>>, vector<1x8x128xf32>
    %10 = vector.shape_cast %9 : vector<1x8x128xf32> to vector<8x128xf32>
    %11 = vector.shape_cast %8 : vector<8x128xf32> to vector<1x8x128xf32>
    tpu.vector_store %arg5[%c0_7, %c0_8, %c0_9], %11 {strides = array<i32>} : memref<1x8x128xf32, #tpu.memory_space<vmem>>, vector<1x8x128xf32>,
    return
  }
  func.func @transform_0(%arg0: i32, %arg1: i32) -> (i32, i32, i32) {
    %c0_i32 = arith.constant 0 : i32
    %c0_i32_0 = arith.constant 0 : i32
    return %arg0, %arg1, %c0_i32 : i32, i32, i32
  }
  func.func @transform_1(%arg0: i32, %arg1: i32) -> (i32, i32) {
    %c0_i32 = arith.constant 0 : i32
    %c0_i32_0 = arith.constant 0 : i32
    %c0_i32_1 = arith.constant 0 : i32
    return %c0_i32, %c0_i32_0 : i32, i32
  }
  func.func @transform_2(%arg0: i32, %arg1: i32) -> (i32, i32) {
    %c0_i32 = arith.constant 0 : i32
    %c0_i32_0 = arith.constant 0 : i32
    %c0_i32_1 = arith.constant 0 : i32
    return %c0_i32, %c0_i32_0 : i32, i32
  }
  func.func @transform_3(%arg0: i32, %arg1: i32) -> (i32, i32, i32) {
    %c0_i32 = arith.constant 0 : i32
    %c0_i32_0 = arith.constant 0 : i32
    return %arg0, %arg1, %c0_i32 : i32, i32, i32
  }
}

module attributes {stable_mosaic.version = 11 : i64} {
  func.func @_linear_relu_kernel(%arg0: i32, %arg1: i32, %arg2: memref<1x8x128xbf16, #tpu.memory_space<vmem>>, %arg3: memref<128x128xbf16, #tpu.memory_space<vmem>>, %arg4: memref<1x128xf32, #tpu.memory_space<vmem>>, %arg5: memref<1x8x128xf32, #tpu.memory_space<vmem>>) attributes {dimension_semantics = [#tpu.dimension_semantics<parallel>, #tpu.dimension_semantics<parallel>], iteration_bounds = array<i64: 2, 1>, scalar_prefetch = 0 : i64, scratch_operands = 0 : i64, tpu.core_type = #tpu.core_type<tc>, window_params = [{transform_indices = @transform_0, window_bounds = array<i64: 1, 8, 128>}, {pipeline_mode = #tpu.pipeline_mode<synchronous>, transform_indices = @transform_1, window_bounds = array<i64: 128, 128>}, {pipeline_mode = #tpu.pipeline_mode<synchronous>, transform_indices = @transform_2, window_bounds = array<i64: 1, 128>}, {transform_indices = @transform_3, window_bounds = array<i64: 1, 8, 128>}]} {
    %c0 = arith.constant 0 : index
    %c0_0 = arith.constant 0 : index
    %c0_1 = arith.constant 0 : index
    %0 = vector.load %arg2[%c0, %c0_0, %c0_1] : memref<1x8x128xbf16, #tpu.memory_space<vmem>>, vector<1x8x128xbf16>
    %1 = vector.shape_cast %0 : vector<1x8x128xbf16> to vector<8x128xbf16>
    %c0_2 = arith.constant 0 : index
    %c0_3 = arith.constant 0 : index
    %2 = vector.load %arg3[%c0_2, %c0_3] : memref<128x128xbf16, #tpu.memory_space<vmem>>, vector<128x128xbf16>
    %cst = arith.constant dense<0.000000e+00> : vector<8x128xf32>
    %3 = tpu.matmul %1, %2, %cst {dimension_numbers = #tpu.dot_dimension_numbers<[1], [0], [0], [1], [0, 0, 1, 1], [], []>} : vector<8x128xbf16>, vector<128x128xbf16>, vector<8x128xf32> -> vector<8x128xf32>
    %c0_4 = arith.constant 0 : index
    %c0_5 = arith.constant 0 : index
    %4 = vector.load %arg4[%c0_4, %c0_5] : memref<1x128xf32, #tpu.memory_space<vmem>>, vector<1x128xf32>
    %5 = vector.broadcast %4 : vector<1x128xf32> to vector<8x128xf32>
    %6 = arith.addf %3, %5 : vector<8x128xf32>
    %cst_6 = arith.constant 0.000000e+00 : f32
    %7 = vector.broadcast %cst_6 : f32 to vector<8x128xf32>
    %8 = arith.maximumf %6, %7 : vector<8x128xf32>
    %c0_7 = arith.constant 0 : index
    %c0_8 = arith.constant 0 : index
    %c0_9 = arith.constant 0 : index
    %9 = vector.load %arg5[%c0_7, %c0_8, %c0_9] : memref<1x8x128xf32, #tpu.memory_space<vmem>>, vector<1x8x128xf32>
    %10 = vector.shape_cast %9 : vector<1x8x128xf32> to vector<8x128xf32>
    %11 = vector.shape_cast %8 : vector<8x128xf32> to vector<1x8x128xf32>
    tpu.vector_store %arg5[%c0_7, %c0_8, %c0_9], %11 {strides = array<i32>} : memref<1x8x128xf32, #tpu.memory_space<vmem>>, vector<1x8x128xf32>,
    return
  }
  func.func @transform_0(%arg0: i32, %arg1: i32) -> (i32, i32, i32) {
    %c0_i32 = arith.constant 0 : i32
    %c0_i32_0 = arith.constant 0 : i32
    return %arg0, %arg1, %c0_i32 : i32, i32, i32
  }
  func.func @transform_1(%arg0: i32, %arg1: i32) -> (i32, i32) {
    %c0_i32 = arith.constant 0 : i32
    %c0_i32_0 = arith.constant 0 : i32
    %c0_i32_1 = arith.constant 0 : i32
    return %c0_i32, %c0_i32_0 : i32, i32
  }
  func.func @transform_2(%arg0: i32, %arg1: i32) -> (i32, i32) {
    %c0_i32 = arith.constant 0 : i32
    %c0_i32_0 = arith.constant 0 : i32
    %c0_i32_1 = arith.constant 0 : i32
    return %c0_i32, %c0_i32_0 : i32, i32
  }
  func.func @transform_3(%arg0: i32, %arg1: i32) -> (i32, i32, i32) {
    %c0_i32 = arith.constant 0 : i32
    %c0_i32_0 = arith.constant 0 : i32
    return %arg0, %arg1, %c0_i32 : i32, i32, i32
  }
}

</mosaic_0001>

<bundles_post_ra>
// kernel: _forward_impl.1
= control target key start
LH: loop header
LB: loop body
LE: loop exit
PB: predicated region body
PF: predicated region fallthrough
CT: control target
= control target key end

     0   :  { %s513_s12 = smov 0   ;;  %s515_s13 = smov 0   ;;  %s577_s0 = inlined_call_operand.vmem [shape: bf16[2,8,128], index: 0, kind: input, shape index: {}]   ;;  %s578_s1 = inlined_call_operand.vmem [shape: bf16[128,128], index: 1, kind: input, shape index: {}]   ;;  %s579_s2 = inlined_call_operand.vmem [shape: f32[1,128], index: 2, kind: input, shape index: {}]   ;;  %s580_s3 = inlined_call_operand.vmem [shape: f32[2,8,128], index: 3, kind: output, shape index: {}]  }
   0x1   :  { %s517_s14 = smov 0  }
   0x2 LB: > { %s25_s15 = sadd.s32 1, %s485_s13  ;;  %p390_p0 = scmp.ge.s32.totalorder %s489_s14, 1  ;;  %s489_s14 = sphi %s517_s14, %s13_s14   ;;  %s485_s13 = sphi %s515_s13, %s582_s13   ;;  %s481_s12 = sphi %s513_s12, %s581_s12  }
   0x3   : > { %p27_p1 = scmp.ge.s32.totalorder %s25_s15, 2  ;;  %p155_p2 = scmp.lt.s32.totalorder %s489_s14, 3 }
   0x5   : > { %s584_s15 = smov (%p27_p1, %s25_s15), 0  ;;  %p156_p3 = pnand %p390_p0, %p155_p2 }
   0x6   : > { %p183_p4 = scmp.lt.s32.totalorder (!%p156_p3), %s481_s12, 1 }
   0x7   : > { %159 = sbr.rel (%p156_p3) target bundleno = 244 (0xf4), region = 32 }
   0xc   : > { %v459_v0 = vld [vmem:[%s578_s1 + $0x38] sm:$0xff]   ;;  %v491_v1 = vmov 0.0   ;;  %v460_v2 = vld [vmem:[%s578_s1 + $0x30] sm:$0xff]   ;;  %vm492_vm0 = vmmov 0   ;;  %v461_v3 = vld [vmem:[%s578_s1 + $0x28] sm:$0xff]   ;;  %s586_s12 = smov (!%p183_p4, %s481_s12), 1 }
   0xd   : > { %413 = vmatprep.subr.bf16.mxu0 %v491_v1  ;;  %429 = vmatprep.mubr.msk.bf16.mxu0 %vm492_vm0, %v491_v1  ;;  %v462_v4 = vld [vmem:[%s578_s1 + $0x20] sm:$0xff]   ;;  %v463_v5 = vld [vmem:[%s578_s1 + $0x18] sm:$0xff]   ;;  %v464_v6 = vld [vmem:[%s578_s1 + $0x10] sm:$0xff]   ;;  %s391_s30 = sshll.u32 %s586_s12, 2  ;;  %s392_s11 = sshll.u32 %s586_s12, 3 }
   0xe   : > { %414 = vmatpush3.bf16.msra.mxu0 %v459_v0  ;;  %v465_v7 = vld [vmem:[%s578_s1 + $0x8] sm:$0xff]   ;;  %v466_v8 = vld [vmem:[%s578_s1] sm:$0xff]   ;;  %s189_s8 = scalar_lea.vmem %s577_s0, %s391_s30  ;;  %s196_s18 = scalar_lea.vmem %s580_s3, %s392_s11 }
   0xf   : > { %415 = vmatprep.subr.bf16.mxu0 %v491_v1  ;;  %v198_v9 = vld [vmem:[%s189_s8] sm:$0xf] }
  0x10   : > { %v393_v10 = vld [vmem:[%s579_s2] ss:$0 sm:$0xff] }
  0x12   : > { %416 = vmatpush3.bf16.msra.mxu0 %v460_v2 }
  0x13   : > { %417 = vmatprep.subr.bf16.mxu0 %v491_v1 }
  0x16   : > { %418 = vmatpush3.bf16.msra.mxu0 %v461_v3 }
  0x17   : > { %419 = vmatprep.subr.bf16.mxu0 %v491_v1 }
  0x1a   : > { %420 = vmatpush3.bf16.msra.mxu0 %v462_v4 }
  0x1b   : > { %421 = vmatprep.subr.bf16.mxu0 %v491_v1 }
  0x1e   : > { %422 = vmatpush3.bf16.msra.mxu0 %v463_v5 }
  0x1f   : > { %423 = vmatprep.subr.bf16.mxu0 %v491_v1 }
  0x22   : > { %424 = vmatpush3.bf16.msra.mxu0 %v464_v6 }
  0x23   : > { %425 = vmatprep.subr.bf16.mxu0 %v491_v1 }
  0x26   : > { %426 = vmatpush3.bf16.msra.mxu0 %v465_v7 }
  0x27   : > { %427 = vmatprep.subr.bf16.mxu0 %v491_v1 }
  0x2a   : > { %428 = vmatpush3.bf16.msra.mxu0 %v466_v8 }
  0x2d   : > { %430 = vmatmul.mubr.bf16.vlgmr.msra.gmra.mxu0 %v198_v9 }
  0xed   : > { %v304_v11 = vpop.f32.mrf.mxu0 }
  0xee   : > { %v305_v12 = vadd.f32 %v393_v10, %v304_v11 }
  0xef   : > { %v431_v13 = vpop.f32.mrf.mxu0 }
  0xf0   : > { %v310_v14 = vmax.f32 %v305_v12, 0.0 }
  0xf1   : > { %v307_v15 = vpop.f32.mrf.mxu0 }
  0xf2   : > { %311 = vst [vmem:[%s196_s18] sm:$0xff] %v310_v14 }
  0xf3   : > { %v432_v16 = vpop.f32.mrf.mxu0 }
  0xf4 PF: > { %s13_s14 = sadd.s32 1, %s489_s14   ;;  %s581_s12 = smov %s485_s13 }
  0xf5   : > { %p10_p5 = scmp.ge.s32.totalorder %s13_s14, 4   ;;  %s582_s13 = smov %s584_s15 }
  0xf7   :  { %12 = sbr.rel (!%p10_p5) target bundleno = 2 (0x2), region = 62 }

// kernel: _forward_impl.1
= control target key start
LH: loop header
LB: loop body
LE: loop exit
PB: predicated region body
PF: predicated region fallthrough
CT: control target
= control target key end

     0   :  { %s513_s12 = smov 0   ;;  %s515_s13 = smov 0   ;;  %s577_s0 = inlined_call_operand.vmem [shape: bf16[2,8,128], index: 0, kind: input, shape index: {}]   ;;  %s578_s1 = inlined_call_operand.vmem [shape: bf16[128,128], index: 1, kind: input, shape index: {}]   ;;  %s579_s2 = inlined_call_operand.vmem [shape: f32[1,128], index: 2, kind: input, shape index: {}]   ;;  %s580_s3 = inlined_call_operand.vmem [shape: f32[2,8,128], index: 3, kind: output, shape index: {}]  }
   0x1   :  { %s517_s14 = smov 0  }
   0x2 LB: > { %s25_s15 = sadd.s32 1, %s485_s13  ;;  %p390_p0 = scmp.ge.s32.totalorder %s489_s14, 1  ;;  %s489_s14 = sphi %s517_s14, %s13_s14   ;;  %s485_s13 = sphi %s515_s13, %s582_s13   ;;  %s481_s12 = sphi %s513_s12, %s581_s12  }
   0x3   : > { %p27_p1 = scmp.ge.s32.totalorder %s25_s15, 2  ;;  %p155_p2 = scmp.lt.s32.totalorder %s489_s14, 3 }
   0x5   : > { %s584_s15 = smov (%p27_p1, %s25_s15), 0  ;;  %p156_p3 = pnand %p390_p0, %p155_p2 }
   0x6   : > { %p183_p4 = scmp.lt.s32.totalorder (!%p156_p3), %s481_s12, 1 }
   0x7   : > { %159 = sbr.rel (%p156_p3) target bundleno = 244 (0xf4), region = 32 }
   0xc   : > { %v459_v0 = vld [vmem:[%s578_s1 + $0x38] sm:$0xff]   ;;  %v491_v1 = vmov 0.0   ;;  %v460_v2 = vld [vmem:[%s578_s1 + $0x30] sm:$0xff]   ;;  %vm492_vm0 = vmmov 0   ;;  %v461_v3 = vld [vmem:[%s578_s1 + $0x28] sm:$0xff]   ;;  %s586_s12 = smov (!%p183_p4, %s481_s12), 1 }
   0xd   : > { %413 = vmatprep.subr.bf16.mxu0 %v491_v1  ;;  %429 = vmatprep.mubr.msk.bf16.mxu0 %vm492_vm0, %v491_v1  ;;  %v462_v4 = vld [vmem:[%s578_s1 + $0x20] sm:$0xff]   ;;  %v463_v5 = vld [vmem:[%s578_s1 + $0x18] sm:$0xff]   ;;  %v464_v6 = vld [vmem:[%s578_s1 + $0x10] sm:$0xff]   ;;  %s391_s30 = sshll.u32 %s586_s12, 2  ;;  %s392_s11 = sshll.u32 %s586_s12, 3 }
   0xe   : > { %414 = vmatpush3.bf16.msra.mxu0 %v459_v0  ;;  %v465_v7 = vld [vmem:[%s578_s1 + $0x8] sm:$0xff]   ;;  %v466_v8 = vld [vmem:[%s578_s1] sm:$0xff]   ;;  %s189_s8 = scalar_lea.vmem %s577_s0, %s391_s30  ;;  %s196_s18 = scalar_lea.vmem %s580_s3, %s392_s11 }
   0xf   : > { %415 = vmatprep.subr.bf16.mxu0 %v491_v1  ;;  %v198_v9 = vld [vmem:[%s189_s8] sm:$0xf] }
  0x10   : > { %v393_v10 = vld [vmem:[%s579_s2] ss:$0 sm:$0xff] }
  0x12   : > { %416 = vmatpush3.bf16.msra.mxu0 %v460_v2 }
  0x13   : > { %417 = vmatprep.subr.bf16.mxu0 %v491_v1 }
  0x16   : > { %418 = vmatpush3.bf16.msra.mxu0 %v461_v3 }
  0x17   : > { %419 = vmatprep.subr.bf16.mxu0 %v491_v1 }
  0x1a   : > { %420 = vmatpush3.bf16.msra.mxu0 %v462_v4 }
  0x1b   : > { %421 = vmatprep.subr.bf16.mxu0 %v491_v1 }
  0x1e   : > { %422 = vmatpush3.bf16.msra.mxu0 %v463_v5 }
  0x1f   : > { %423 = vmatprep.subr.bf16.mxu0 %v491_v1 }
  0x22   : > { %424 = vmatpush3.bf16.msra.mxu0 %v464_v6 }
  0x23   : > { %425 = vmatprep.subr.bf16.mxu0 %v491_v1 }
  0x26   : > { %426 = vmatpush3.bf16.msra.mxu0 %v465_v7 }
  0x27   : > { %427 = vmatprep.subr.bf16.mxu0 %v491_v1 }
  0x2a   : > { %428 = vmatpush3.bf16.msra.mxu0 %v466_v8 }
  0x2d   : > { %430 = vmatmul.mubr.bf16.vlgmr.msra.gmra.mxu0 %v198_v9 }
  0xed   : > { %v304_v11 = vpop.f32.mrf.mxu0 }
  0xee   : > { %v305_v12 = vadd.f32 %v393_v10, %v304_v11 }
  0xef   : > { %v431_v13 = vpop.f32.mrf.mxu0 }
  0xf0   : > { %v310_v14 = vmax.f32 %v305_v12, 0.0 }
  0xf1   : > { %v307_v15 = vpop.f32.mrf.mxu0 }
  0xf2   : > { %311 = vst [vmem:[%s196_s18] sm:$0xff] %v310_v14 }
  0xf3   : > { %v432_v16 = vpop.f32.mrf.mxu0 }
  0xf4 PF: > { %s13_s14 = sadd.s32 1, %s489_s14   ;;  %s581_s12 = smov %s485_s13 }
  0xf5   : > { %p10_p5 = scmp.ge.s32.totalorder %s13_s14, 4   ;;  %s582_s13 = smov %s584_s15 }
  0xf7   :  { %12 = sbr.rel (!%p10_p5) target bundleno = 2 (0x2), region = 62 }

</bundles_post_ra>
